<compile_context>
chip_gen: v7x
topology: tpu7x:2x2x1
jax: 0.10.0
libtpu: 0.0.40
codegen_flags: <defaults>
</compile_context>

<pallas_src>
import jax
import jax.numpy as jnp
from jax.experimental import pallas as pl
from jax.experimental.pallas import tpu as pltpu

IN_FEATURES = 28 * 28          # 784
OUT_FEATURES = 10
OUT_PAD = 128                  # lane-dense padded output width (multiple of 128)
MAX_TB = 4096                  # max batch-tile rows (multiple of 8), ~35 MiB VMEM w/ buffers
VMEM_LIMIT_BYTES = 48 * 1024 * 1024  # explicit scoped-VMEM limit: ok on v5e/v6e, < 64 MiB v7x


def _round_up(n, m):
    return ((n + m - 1) // m) * m


def _choose_tb(batch):
    """Batch tile rows: multiple of 8, capped at MAX_TB. For batch > 16 size the
    tile to ~half the batch so the grid has >= 2 steps (required for the
    "parallel" batch axis to actually use both TensorCores on v7x)."""
    if batch <= 16:
        return _round_up(max(batch, 1), 8)
    return min(MAX_TB, _round_up(pl.cdiv(batch, 2), 8))


def linear_kernel(x_ref, w_ref, b_ref, o_ref):
    # x_ref: (TB, 784)  w_ref: (784, 128)  b_ref: (1, 128) f32  o_ref: (TB, 128) f32
    acc = jnp.dot(x_ref[...], w_ref[...], preferred_element_type=jnp.float32)
    o_ref[...] = acc + b_ref[...]


def pad_params(w_t, b, compute_dtype=jnp.float32):
    """Pad weight/bias to 128 output lanes ONCE (call at init / outside the attack
    loop) so the per-forward wrapper does zero parameter work.

    compute_dtype=jnp.bfloat16 is an opt-in fast path (halves x/W HBM traffic,
    keeps f32 accumulation) but does NOT meet the 1e-5 f32 tolerance.
    """
    w_pad = jnp.zeros((IN_FEATURES, OUT_PAD), compute_dtype)
    w_pad = w_pad.at[:, :OUT_FEATURES].set(w_t.astype(compute_dtype))
    b_pad = jnp.zeros((1, OUT_PAD), jnp.float32)
    b_pad = b_pad.at[:, :OUT_FEATURES].set(b.astype(jnp.float32))
    return w_pad, b_pad


def simple_model_forward(x, w_pad, b_pad):
    """SimpleModel.forward: Linear(784, 10)(x.view(-1, 784)).

    x: (B, 1, 28, 28) or (B, 784); w_pad: (784, 128); b_pad: (1, 128).
    Returns (B, 10) f32 logits.
    """
    # The NCHW flatten is a contiguous view; XLA lowers it to a bitcast/no-op.
    x2d = x.reshape(-1, IN_FEATURES)
    compute_dtype = w_pad.dtype
    if x2d.dtype != compute_dtype:
        x2d = x2d.astype(compute_dtype)
    B = x2d.shape[0]

    TB = _choose_tb(B)
    # No batch padding: Pallas bounds the DMA of the partial last tile, and OOB
    # output rows are never written back, so no extra HBM pass over x is needed.
    grid = (pl.cdiv(B, TB),)

    in_bytes = jnp.dtype(compute_dtype).itemsize
    cost = pl.CostEstimate(
        flops=2 * B * IN_FEATURES * OUT_PAD,
        transcendentals=0,
        bytes_accessed=(B * IN_FEATURES * in_bytes          # stream x
                        + IN_FEATURES * OUT_PAD * in_bytes  # resident W (read once)
                        + OUT_PAD * 4                       # resident bias
                        + B * OUT_PAD * 4),                 # write padded logits
    )

    out_pad = pl.pallas_call(
        linear_kernel,
        out_shape=jax.ShapeDtypeStruct((B, OUT_PAD), jnp.float32),
        grid_spec=pltpu.PrefetchScalarGridSpec(
            num_scalar_prefetch=0,
            grid=grid,
            in_specs=[
                pl.BlockSpec((TB, IN_FEATURES), lambda i: (i, 0)),       # streamed / double-buffered
                pl.BlockSpec((IN_FEATURES, OUT_PAD), lambda i: (0, 0)),  # VMEM-resident weight
                pl.BlockSpec((1, OUT_PAD), lambda i: (0, 0)),            # VMEM-resident bias
            ],
            out_specs=pl.BlockSpec((TB, OUT_PAD), lambda i: (i, 0)),
        ),
        compiler_params=pltpu.CompilerParams(
            dimension_semantics=("parallel",),      # independent batch axis -> both TCs on v7x
            vmem_limit_bytes=VMEM_LIMIT_BYTES,      # needed on v5e for TB > 1024; safe everywhere
        ),
        cost_estimate=cost,
    )(x2d, w_pad, b_pad)

    # NOTE: in a fused pipeline (e.g. the DeepFool gradient loop) prefer consuming
    # the lane-padded (B, 128) slab directly (padded columns are exact zeros), or
    # keep this slice inside the same jit as its consumer so XLA fuses it away.
    return out_pad[:, :OUT_FEATURES]


def init_params(key):
    """Deterministic init matching nn.Linear's default: U(-1/sqrt(fan_in), 1/sqrt(fan_in))."""
    k_w, k_b = jax.random.split(key)
    bound = 1.0 / jnp.sqrt(jnp.float32(IN_FEATURES))
    # PyTorch stores weight as (out, in); we keep the transpose (in, out).
    w = jax.random.uniform(k_w, (OUT_FEATURES, IN_FEATURES), jnp.float32,
                           minval=-bound, maxval=bound)
    b = jax.random.uniform(k_b, (OUT_FEATURES,), jnp.float32,
                           minval=-bound, maxval=bound)
    return w.T, b  # (784, 10), (10,)


if __name__ == "__main__":
    key = jax.random.PRNGKey(0)
    k_x, k_p = jax.random.split(key)

    # Small input consistent with the 28*28 flatten: (B=2, C=1, 28, 28)
    x = jax.random.normal(k_x, (2, 1, 28, 28), jnp.float32)
    w_t, b = init_params(k_p)

    # Pad params ONCE (outside the forward / attack loop).
    w_pad, b_pad = pad_params(w_t, b)

    fwd = jax.jit(simple_model_forward)
    out = jax.block_until_ready(fwd(x, w_pad, b_pad))

    # Cross-check against plain JAX reference.
    ref = x.reshape(-1, IN_FEATURES) @ w_t + b[None, :]
    assert out.shape == (2, OUT_FEATURES)
    assert jnp.allclose(out, ref, atol=1e-5, rtol=1e-5)

    print("KERNEL_OK")
</pallas_src>

<mosaic_0001>
module attributes {stable_mosaic.version = 11 : i64} {
  func.func @linear_kernel(%arg0: i32, %arg1: memref<8x784xf32, #tpu.memory_space<vmem>>, %arg2: memref<784x128xf32, #tpu.memory_space<vmem>>, %arg3: memref<1x128xf32, #tpu.memory_space<vmem>>, %arg4: memref<8x128xf32, #tpu.memory_space<vmem>>) attributes {dimension_semantics = [#tpu.dimension_semantics<parallel>], iteration_bounds = array<i64: 1>, scalar_prefetch = 0 : i64, scratch_operands = 0 : i64, tpu.core_type = #tpu.core_type<tc>, window_params = [{transform_indices = @transform_0, window_bounds = array<i64: 8, 784>}, {pipeline_mode = #tpu.pipeline_mode<synchronous>, transform_indices = @transform_1, window_bounds = array<i64: 784, 128>}, {pipeline_mode = #tpu.pipeline_mode<synchronous>, transform_indices = @transform_2, window_bounds = array<i64: 1, 128>}, {transform_indices = @transform_3, window_bounds = array<i64: 8, 128>}]} {
    %c0 = arith.constant 0 : index
    %c0_0 = arith.constant 0 : index
    %0 = vector.load %arg1[%c0, %c0_0] : memref<8x784xf32, #tpu.memory_space<vmem>>, vector<8x784xf32>
    %c0_1 = arith.constant 0 : index
    %c0_2 = arith.constant 0 : index
    %1 = vector.load %arg2[%c0_1, %c0_2] : memref<784x128xf32, #tpu.memory_space<vmem>>, vector<784x128xf32>
    %cst = arith.constant dense<0.000000e+00> : vector<8x128xf32>
    %2 = tpu.matmul %0, %1, %cst {dimension_numbers = #tpu.dot_dimension_numbers<[1], [0], [0], [1], [0, 0, 1, 1], [], []>} : vector<8x784xf32>, vector<784x128xf32>, vector<8x128xf32> -> vector<8x128xf32>
    %c0_3 = arith.constant 0 : index
    %c0_4 = arith.constant 0 : index
    %3 = vector.load %arg3[%c0_3, %c0_4] : memref<1x128xf32, #tpu.memory_space<vmem>>, vector<1x128xf32>
    %4 = vector.broadcast %3 : vector<1x128xf32> to vector<8x128xf32>
    %5 = arith.addf %2, %4 : vector<8x128xf32>
    %c0_5 = arith.constant 0 : index
    %c0_6 = arith.constant 0 : index
    %6 = vector.load %arg4[%c0_5, %c0_6] : memref<8x128xf32, #tpu.memory_space<vmem>>, vector<8x128xf32>
    tpu.vector_store %arg4[%c0_5, %c0_6], %5 {strides = array<i32>} : memref<8x128xf32, #tpu.memory_space<vmem>>, vector<8x128xf32>,
    return
  }
  func.func @transform_0(%arg0: i32) -> (i32, i32) {
    %c0_i32 = arith.constant 0 : i32
    %c0_i32_0 = arith.constant 0 : i32
    return %arg0, %c0_i32 : i32, i32
  }
  func.func @transform_1(%arg0: i32) -> (i32, i32) {
    %c0_i32 = arith.constant 0 : i32
    %c0_i32_0 = arith.constant 0 : i32
    %c0_i32_1 = arith.constant 0 : i32
    return %c0_i32, %c0_i32_0 : i32, i32
  }
  func.func @transform_2(%arg0: i32) -> (i32, i32) {
    %c0_i32 = arith.constant 0 : i32
    %c0_i32_0 = arith.constant 0 : i32
    %c0_i32_1 = arith.constant 0 : i32
    return %c0_i32, %c0_i32_0 : i32, i32
  }
  func.func @transform_3(%arg0: i32) -> (i32, i32) {
    %c0_i32 = arith.constant 0 : i32
    %c0_i32_0 = arith.constant 0 : i32
    return %arg0, %c0_i32 : i32, i32
  }
}

</mosaic_0001>

<bundles_post_ra>
// kernel: simple_model_forward.1
= control target key start
LH: loop header
LB: loop body
LE: loop exit
PB: predicated region body
PF: predicated region fallthrough
CT: control target
= control target key end

     0   :  { %8 = vsyncpa [#allocation3], 0  ;;  %s905_s0 = inlined_call_operand.vmem [shape: f32[2,784], index: 0, kind: input, shape index: {}]   ;;  %s906_s1 = inlined_call_operand.hbm [shape: f32[784,128], index: 1, kind: input, shape index: {}]   ;;  %s907_s2 = inlined_call_operand.vmem [shape: f32[1,128], index: 2, kind: input, shape index: {}]   ;;  %s908_s3 = inlined_call_operand.hbm [shape: f32[2,128], index: 3, kind: output, shape index: {}]  }
   0x1   :  { %9 = vsyncpa [#allocation4], 0  ;;  %s814_s12 = smov [#allocation2]   ;;  %s766_s16 = scalar_lea.hbm %s906_s1, 12544 }
   0x2   :  { %s17_s13 = sshll.u32 %s814_s12, 4  ;;  %p767_p0 = scmp.ne.s32.totalorder %s906_s1, %s766_s16  ;;  %s18_s13 = int_to_ptr.vmem [resolvable:$true] %s17_s13 }
   0x3   :  { %p770_p1 = scmp.lt.u32.totalorder %s766_s16, %s906_s1 }
   0x5   :  { %p772_p2 = pnand %p770_p1, %p767_p0 }
   0x7   :  { %775 = shalt.err (!%p772_p2)
}
   0x8   :  { %s776_s21 = scalar_lea.vmem %s18_s13, 12544  ;;  %p781_p4 = scmp.lt.s32.totalorder %s18_s13, %s18_s13 }
   0x9   :  { %p777_p3 = scmp.ne.s32.totalorder %s18_s13, %s776_s21  ;;  %p782_p5 = scmp.lt.s32.totalorder %s776_s21, %s776_s21 }
   0xb   :  { %p783_p6 = por %p782_p5, %p781_p4 }
   0xd   :  { %p784_p7 = pnand %p783_p6, %p777_p3 }
   0xf   :  { %787 = shalt.err (!%p784_p7)
}
  0x10   :  { %s815_s22 = smov 128   ;;  %s816_s23 = smov 8  }
  0x11   :  { %23 = dma.hbm_to_vmem [thread:$0]  %s906_s1, 12544, %s18_s13, [#allocation3], %s815_s22, %s815_s22, %s816_s23  }
  0x12   :  { %810 = dma.done.wait [#allocation3], 12544  }
  0x13   :  { %811 = vsyncadd [#allocation3], 4294954752  ;;  %v53_v0 = vld [vmem:[#allocation2 + $0x80] sm:$0xff]  ;;  %v54_v1 = vld [vmem:[#allocation2 + $0x88] sm:$0xff]  ;;  %v817_v51 = vmov 1983009808   ;;  %v157_v53 = vlaneseq }
  0x14   :  { %v37_v2 = vld [vmem:[#allocation2] sm:$0xff]  ;;  %v645_v3 = vpack.c.bf16 %v54_v1, %v53_v0  ;;  %v38_v4 = vld [vmem:[#allocation2 + $0x8] sm:$0xff]  ;;  %v55_v11 = vld [vmem:[#allocation2 + $0x90] sm:$0xff]  ;;  %v155_v52 = vunpack.c.l.s4 %v817_v51  ;;  %vm819_vm0 = vmmov 0   ;;  %vm227_vm1 = vcmask 130048  }
  0x15   :  { %v85_v5 = vld [vmem:[#allocation2 + $0x180] sm:$0xff]  ;;  %v86_v6 = vld [vmem:[#allocation2 + $0x188] sm:$0xff]  ;;  %v647_v7 = vpack.c.bf16 %v38_v4, %v37_v2  ;;  %v56_v13 = vld [vmem:[#allocation2 + $0x98] sm:$0xff] }
  0x16   :  { %v677_v8 = vpack.c.bf16 %v86_v6, %v85_v5  ;;  %v69_v9 = vld [vmem:[#allocation2 + $0x100] sm:$0xff]  ;;  %v70_v10 = vld [vmem:[#allocation2 + $0x108] sm:$0xff]  ;;  %646 = vmatprep.subr.bf16.mxu0 %v645_v3  ;;  %v39_v14 = vld [vmem:[#allocation2 + $0x10] sm:$0xff]  ;;  %v649_v16 = vpack.c.bf16 %v56_v13, %v55_v11  ;;  %v156_v2 = vunpack.c.0.s8 %v155_v52  ;;  %v158_v3 = vshrl.u32 %v157_v53, 7 }
  0x17   :  { %v679_v12 = vpack.c.bf16 %v70_v10, %v69_v9  ;;  %v40_v15 = vld [vmem:[#allocation2 + $0x18] sm:$0xff]  ;;  %648 = vmatpush3.bf16.msra.mxu0 %v647_v7  ;;  %v87_v18 = vld [vmem:[#allocation2 + $0x190] sm:$0xff]  ;;  %v57_v23 = vld [vmem:[#allocation2 + $0xa0] sm:$0xff] }
  0x18   :  { %678 = vmatprep.subr.bf16.mxu1 %v677_v8  ;;  %v651_v17 = vpack.c.bf16 %v40_v15, %v39_v14  ;;  %v88_v19 = vld [vmem:[#allocation2 + $0x198] sm:$0xff]  ;;  %v71_v20 = vld [vmem:[#allocation2 + $0x110] sm:$0xff]  ;;  %v58_v24 = vld [vmem:[#allocation2 + $0xa8] sm:$0xff]  ;;  %650 = vmatprep.subr.bf16.mxu0 %v649_v16 }
  0x19   :  { %680 = vmatpush3.bf16.msra.mxu1 %v679_v12  ;;  %v681_v21 = vpack.c.bf16 %v88_v19, %v87_v18  ;;  %v72_v22 = vld [vmem:[#allocation2 + $0x118] sm:$0xff]  ;;  %v653_v26 = vpack.c.bf16 %v58_v24, %v57_v23  ;;  %v41_v27 = vld [vmem:[#allocation2 + $0x20] sm:$0xff]  ;;  %v42_v28 = vld [vmem:[#allocation2 + $0x28] sm:$0xff] }
  0x1a   :  { %v683_v25 = vpack.c.bf16 %v72_v22, %v71_v20  ;;  %v89_v29 = vld [vmem:[#allocation2 + $0x1a0] sm:$0xff]  ;;  %v90_v30 = vld [vmem:[#allocation2 + $0x1a8] sm:$0xff]  ;;  %v655_v33 = vpack.c.bf16 %v42_v28, %v41_v27  ;;  %v59_v35 = vld [vmem:[#allocation2 + $0xb0] sm:$0xff] }
  0x1b   :  { %682 = vmatprep.subr.bf16.mxu1 %v681_v21  ;;  %v73_v31 = vld [vmem:[#allocation2 + $0x120] sm:$0xff]  ;;  %v74_v32 = vld [vmem:[#allocation2 + $0x128] sm:$0xff]  ;;  %652 = vmatpush3.bf16.msra.mxu0 %v651_v17  ;;  %v685_v34 = vpack.c.bf16 %v90_v30, %v89_v29  ;;  %v60_v36 = vld [vmem:[#allocation2 + $0xb8] sm:$0xff]  ;;  %v856_v21 = vsub.s32 %v156_v2, %v158_v3 }
  0x1c   :  { %v43_v37 = vld [vmem:[#allocation2 + $0x30] sm:$0xff]  ;;  %654 = vmatprep.subr.bf16.mxu0 %v653_v26  ;;  %v687_v38 = vpack.c.bf16 %v74_v32, %v73_v31  ;;  %v657_v39 = vpack.c.bf16 %v60_v36, %v59_v35  ;;  %v44_v40 = vld [vmem:[#allocation2 + $0x38] sm:$0xff]  ;;  %v61_v46 = vld [vmem:[#allocation2 + $0xc0] sm:$0xff] }
  0x1d   :  { %684 = vmatpush3.bf16.msra.mxu1 %v683_v25  ;;  %v91_v41 = vld [vmem:[#allocation2 + $0x1b0] sm:$0xff]  ;;  %v92_v42 = vld [vmem:[#allocation2 + $0x1b8] sm:$0xff]  ;;  %v62_v47 = vld [vmem:[#allocation2 + $0xc8] sm:$0xff]  ;;  %v659_v48 = vpack.c.bf16 %v44_v40, %v43_v37 }
  0x1e   :  { %686 = vmatprep.subr.bf16.mxu1 %v685_v34  ;;  %v689_v43 = vpack.c.bf16 %v92_v42, %v91_v41  ;;  %v75_v44 = vld [vmem:[#allocation2 + $0x130] sm:$0xff]  ;;  %v76_v45 = vld [vmem:[#allocation2 + $0x138] sm:$0xff]  ;;  %v93_v49 = vld [vmem:[#allocation2 + $0x1c0] sm:$0xff]  ;;  %v661_v55 = vpack.c.bf16 %v62_v47, %v61_v46 }
  0x1f   :  { %656 = vmatpush3.bf16.msra.mxu0 %v655_v33  ;;  %v94_v50 = vld [vmem:[#allocation2 + $0x1c8] sm:$0xff]  ;;  %v691_v54 = vpack.c.bf16 %v76_v45, %v75_v44  ;;  %v45_v56 = vld [vmem:[#allocation2 + $0x40] sm:$0xff]  ;;  %v63_v61 = vld [vmem:[#allocation2 + $0xd0] sm:$0xff] }
  0x20   :  { %658 = vmatprep.subr.bf16.mxu0 %v657_v39  ;;  %v46_v57 = vld [vmem:[#allocation2 + $0x48] sm:$0xff]  ;;  %v77_v58 = vld [vmem:[#allocation2 + $0x140] sm:$0xff]  ;;  %v693_v59 = vpack.c.bf16 %v94_v50, %v93_v49  ;;  %v64_v62 = vld [vmem:[#allocation2 + $0xd8] sm:$0xff] }
  0x21   :  { %688 = vmatpush3.bf16.msra.mxu1 %v687_v38  ;;  %v78_v60 = vld [vmem:[#allocation2 + $0x148] sm:$0xff]  ;;  %v95_v63 = vld [vmem:[#allocation2 + $0x1d0] sm:$0xff]  ;;  %v96_v0 = vld [vmem:[#allocation2 + $0x1d8] sm:$0xff]  ;;  %v663_v1 = vpack.c.bf16 %v46_v57, %v45_v56  ;;  %v665_v5 = vpack.c.bf16 %v64_v62, %v63_v61 }
  0x22   :  { %690 = vmatprep.subr.bf16.mxu1 %v689_v43  ;;  %v695_v4 = vpack.c.bf16 %v78_v60, %v77_v58  ;;  %v47_v6 = vld [vmem:[#allocation2 + $0x50] sm:$0xff]  ;;  %v48_v7 = vld [vmem:[#allocation2 + $0x58] sm:$0xff]  ;;  %v697_v9 = vpack.c.bf16 %v96_v0, %v95_v63  ;;  %v65_v11 = vld [vmem:[#allocation2 + $0xe0] sm:$0xff]  ;;  %v818_v63 = vmov 0.0|0.0  }
  0x23   :  { %660 = vmatpush3.bf16.msra.mxu0 %v659_v48  ;;  %v79_v8 = vld [vmem:[#allocation2 + $0x150] sm:$0xff]  ;;  %v80_v10 = vld [vmem:[#allocation2 + $0x158] sm:$0xff]  ;;  %v66_v12 = vld [vmem:[#allocation2 + $0xe8] sm:$0xff]  ;;  %v667_v17 = vpack.c.bf16 %v48_v7, %v47_v6 }
  0x24   :  { %662 = vmatprep.subr.bf16.mxu0 %v661_v55  ;;  %v49_v13 = vld [vmem:[#allocation2 + $0x60] sm:$0xff]  ;;  %v50_v14 = vld [vmem:[#allocation2 + $0x68] sm:$0xff]  ;;  %v67_v20 = vld [vmem:[#allocation2 + $0xf0] sm:$0xff]  ;;  %v699_v22 = vpack.c.bf16 %v80_v10, %v79_v8  ;;  %v669_v23 = vpack.c.bf16 %v66_v12, %v65_v11  ;;  %v820_v10 = vmov 0.0  }
  0x25   :  { %692 = vmatpush3.bf16.msra.mxu1 %v691_v54  ;;  %v97_v15 = vld [vmem:[#allocation2 + $0x1e0] sm:$0xff]  ;;  %v98_v16 = vld [vmem:[#allocation2 + $0x1e8] sm:$0xff]  ;;  %v68_v25 = vld [vmem:[#allocation2 + $0xf8] sm:$0xff]  ;;  %v671_v30 = vpack.c.bf16 %v50_v14, %v49_v13 }
  0x26   :  { %694 = vmatprep.subr.bf16.mxu1 %v693_v59  ;;  %v81_v18 = vld [vmem:[#allocation2 + $0x160] sm:$0xff]  ;;  %v82_v19 = vld [vmem:[#allocation2 + $0x168] sm:$0xff]  ;;  %v701_v24 = vpack.c.bf16 %v98_v16, %v97_v15  ;;  %v99_v28 = vld [vmem:[#allocation2 + $0x1f0] sm:$0xff]  ;;  %v673_v36 = vpack.c.bf16 %v68_v25, %v67_v20 }
  0x27   :  { %664 = vmatpush3.bf16.msra.mxu0 %v663_v1  ;;  %v754_v26 = vld [vmem:[%s905_s0] ss:$14 sps:$4 sm:$0xff]   ;;  %v756_v27 = vld [vmem:[%s905_s0 + $0x1c] ss:$14 sps:$4 sm:$0xff]   ;;  %v758_v33 = vld [vmem:[%s905_s0 + $0x4] ss:$14 sps:$4 sm:$0xff]   ;;  %v703_v35 = vpack.c.bf16 %v82_v19, %v81_v18 }
  0x28   :  { %666 = vmatprep.subr.bf16.mxu0 %v665_v5  ;;  %v100_v29 = vld [vmem:[#allocation2 + $0x1f8] sm:$0xff]  ;;  %v160_v31 = vrot.slane %v754_v26, %v856_v21  ;;  %v174_v32 = vrot.slane %v756_v27, %v856_v21  ;;  %v759_v34 = vld [vmem:[%s905_s0 + $0x20] ss:$14 sps:$4 sm:$0xff]   ;;  %v167_v45 = vrot.slane %v758_v33, %v856_v21  ;;  %v763_v7 = vld [vmem:[%s905_s0 + $0x24] ss:$14 sps:$4 sm:$0xff]  }
  0x29   :  { %696 = vmatpush3.bf16.msra.mxu1 %v695_v4  ;;  %v51_v37 = vld [vmem:[#allocation2 + $0x70] sm:$0xff]  ;;  %v52_v38 = vld [vmem:[#allocation2 + $0x78] sm:$0xff]  ;;  %v705_v40 = vpack.c.bf16 %v100_v29, %v99_v28  ;;  %v117_v43 = vld [vmem:[#allocation2 + $0x280] sm:$0xff]  ;;  %v181_v46 = vrot.slane %v759_v34, %v856_v21  ;;  %v210_v16 = vrot.slane %v763_v7, %v856_v21 }
  0x2a   :  { %698 = vmatprep.subr.bf16.mxu1 %v697_v9  ;;  %v83_v39 = vld [vmem:[#allocation2 + $0x170] sm:$0xff]  ;;  %v183_v41 = vcombine.high %v160_v31, %v174_v32  ;;  %v84_v42 = vld [vmem:[#allocation2 + $0x178] sm:$0xff]  ;;  %v118_v44 = vld [vmem:[#allocation2 + $0x288] sm:$0xff]  ;;  %v675_v47 = vpack.c.bf16 %v52_v38, %v51_v37  ;;  %v182_v55 = vcombine.low %v160_v31, %v174_v32 }
  0x2b   :  { %668 = vmatpush3.bf16.msra.mxu0 %v667_v17  ;;  %v185_v48 = vcombine.high %v167_v45, %v181_v46  ;;  %v707_v49 = vpack.c.bf16 %v84_v42, %v83_v39  ;;  %v709_v50 = vpack.c.bf16 %v118_v44, %v117_v43  ;;  %v101_v51 = vld [vmem:[#allocation2 + $0x200] sm:$0xff]  ;;  %v102_v52 = vld [vmem:[#allocation2 + $0x208] sm:$0xff]  ;;  %v119_v53 = vld [vmem:[#allocation2 + $0x290] sm:$0xff]  ;;  %v184_v57 = vcombine.low %v167_v45, %v181_v46 }
  0x2c   :  { %670 = vmatprep.subr.bf16.mxu0 %v669_v23  ;;  %294 = vmatprep.mubr.f32.mxu0 %v183_v41  ;;  %v120_v54 = vld [vmem:[#allocation2 + $0x298] sm:$0xff]  ;;  %v711_v56 = vpack.c.bf16 %v102_v52, %v101_v51  ;;  %v103_v59 = vld [vmem:[#allocation2 + $0x210] sm:$0xff]  ;;  %v121_v61 = vld [vmem:[#allocation2 + $0x2a0] sm:$0xff] }
  0x2d   :  { %700 = vmatpush3.bf16.msra.mxu1 %v699_v22  ;;  %364 = vmatprep.mubr.f32.mxu1 %v185_v48  ;;  %v713_v58 = vpack.c.bf16 %v120_v54, %v119_v53  ;;  %v104_v60 = vld [vmem:[#allocation2 + $0x218] sm:$0xff]  ;;  %v122_v62 = vld [vmem:[#allocation2 + $0x2a8] sm:$0xff]  ;;  %v105_v0 = vld [vmem:[#allocation2 + $0x220] sm:$0xff] }
  0x2e   :  { %702 = vmatprep.subr.bf16.mxu1 %v701_v24  ;;  %v106_v1 = vld [vmem:[#allocation2 + $0x228] sm:$0xff]  ;;  %v715_v2 = vpack.c.bf16 %v104_v60, %v103_v59  ;;  %v133_v5 = vld [vmem:[#allocation2 + $0x300] sm:$0xff]  ;;  %v717_v6 = vpack.c.bf16 %v122_v62, %v121_v61  ;;  %v123_v11 = vld [vmem:[#allocation2 + $0x2b0] sm:$0xff] }
  0x2f   :  { %672 = vmatpush3.bf16.msra.mxu0 %v671_v30  ;;  %v760_v3 = vld [vmem:[%s905_s0 + $0x8] ss:$14 sps:$4 sm:$0xff]   ;;  %v762_v4 = vld [vmem:[%s905_s0 + $0xc] ss:$14 sps:$4 sm:$0x33]   ;;  %v719_v18 = vpack.c.bf16 %v106_v1, %v105_v0  ;;  %v125_v25 = vld [vmem:[#allocation2 + $0x2c0] sm:$0xff] }
  0x30   :  { %674 = vmatprep.subr.bf16.mxu0 %v673_v36  ;;  %v765_v8 = vld [vmem:[%s905_s0 + $0x28] ss:$14 sps:$4 sm:$0x33]   ;;  %v124_v12 = vld [vmem:[#allocation2 + $0x2b8] sm:$0xff]  ;;  %v196_v13 = vrot.slane %v760_v3, %v856_v21  ;;  %v203_v14 = vrot.slane %v762_v4, %v856_v21  ;;  %v109_v29 = vld [vmem:[#allocation2 + $0x240] sm:$0xff] }
  0x31   :  { %704 = vmatpush3.bf16.msra.mxu1 %v703_v35  ;;  %v134_v9 = vld [vmem:[#allocation2 + $0x308] sm:$0xff]  ;;  %v217_v17 = vrot.slane %v765_v8, %v856_v21  ;;  %v721_v19 = vpack.c.bf16 %v124_v12, %v123_v11  ;;  %v107_v20 = vld [vmem:[#allocation2 + $0x230] sm:$0xff]  ;;  %v108_v22 = vld [vmem:[#allocation2 + $0x238] sm:$0xff] }
  0x32   :  { %706 = vmatprep.subr.bf16.mxu1 %v705_v40  ;;  %v742_v15 = vpack.c.bf16 %v134_v9, %v133_v5  ;;  %v219_v23 = vcombine.high %v196_v13, %v210_v16  ;;  %v126_v26 = vld [vmem:[#allocation2 + $0x2c8] sm:$0xff]  ;;  %v723_v27 = vpack.c.bf16 %v108_v22, %v107_v20  ;;  %v127_v30 = vld [vmem:[#allocation2 + $0x2d0] sm:$0xff]  ;;  %v128_v31 = vld [vmem:[#allocation2 + $0x2d8] sm:$0xff] }
  0x33   :  { %676 = vmatpush3.bf16.msra.mxu0 %v675_v47  ;;  %v220_v24 = vcombine.low %v203_v14, %v217_v17  ;;  %v725_v28 = vpack.c.bf16 %v126_v26, %v125_v25  ;;  %v110_v21 = vld [vmem:[#allocation2 + $0x248] sm:$0xff]  ;;  %v729_v33 = vpack.c.bf16 %v128_v31, %v127_v30  ;;  %v111_v34 = vld [vmem:[#allocation2 + $0x250] sm:$0xff]  ;;  %v112_v35 = vld [vmem:[#allocation2 + $0x258] sm:$0xff] }
  0x34   :  { %710 = vmatprep.subr.bf16.mxu0 %v709_v50  ;;  %v727_v32 = vpack.c.bf16 %v110_v21, %v109_v29  ;;  %v129_v36 = vld [vmem:[#allocation2 + $0x2e0] sm:$0xff]  ;;  %v130_v37 = vld [vmem:[#allocation2 + $0x2e8] sm:$0xff]  ;;  %v731_v38 = vpack.c.bf16 %v112_v35, %v111_v34  ;;  %v131_v42 = vld [vmem:[#allocation2 + $0x2f0] sm:$0xff] }
  0x35   :  { %708 = vmatpush3.bf16.msra.mxu1 %v707_v49  ;;  %v733_v39 = vpack.c.bf16 %v130_v37, %v129_v36  ;;  %v113_v40 = vld [vmem:[#allocation2 + $0x260] sm:$0xff]  ;;  %v114_v41 = vld [vmem:[#allocation2 + $0x268] sm:$0xff]  ;;  %v132_v43 = vld [vmem:[#allocation2 + $0x2f8] sm:$0xff]  ;;  %v218_v49 = vcombine.low %v196_v13, %v210_v16 }
  0x36   :  { %741 = vmatprep.subr.bf16.mxu1 %v818_v63  ;;  %295 = vmatmul.mubr.f32.vlgmr.msra.gmra.mrb[0].mxu0 %v182_v55  ;;  %v735_v44 = vpack.c.bf16 %v114_v41, %v113_v40  ;;  %v737_v45 = vpack.c.bf16 %v132_v43, %v131_v42  ;;  %v115_v46 = vld [vmem:[#allocation2 + $0x270] sm:$0xff]  ;;  %v116_v47 = vld [vmem:[#allocation2 + $0x278] sm:$0xff]  ;;  %v528_v51 = vld [vmem:[%s907_s2] ss:$0 sm:$0xff] }
  0x37   :  { %712 = vmatpush3.bf16.msra.mxu0 %v711_v56  ;;  %434 = vmatprep.mubr.f32.mxu0 %v219_v23  ;;  %v739_v48 = vpack.c.bf16 %v116_v47, %v115_v46 }
  0x38   :  { %365 = vmatmul.mubr.f32.vlgmr.msra.gmra.mrb[0].mxu1 %v184_v57  ;;  %714 = vmatprep.subr.bf16.mxu0 %v713_v58 }
  0x39   :  { %642 = vmatprep.mubr.msk.f32.mxu1 %vm819_vm0, %v820_v10  ;;  %743 = vmatpush3.bf16.msra.mxu1 %v742_v15 }
  0x3b   :  { %716 = vmatpush3.bf16.msra.mxu0 %v715_v2 }
  0x3c   :  { %718 = vmatprep.subr.bf16.mxu0 %v717_v6  ;;  %643 = vmatmul.mubr.msk.f32.vlgmr.msra.gmra.mrb[2].mxu1 %vm227_vm1, %v220_v24 }
  0x3f   :  { %720 = vmatpush3.bf16.msra.mxu0 %v719_v18 }
  0x40   :  { %722 = vmatprep.subr.bf16.mxu0 %v721_v19 }
  0x43   :  { %724 = vmatpush3.bf16.msra.mxu0 %v723_v27 }
  0x44   :  { %726 = vmatprep.subr.bf16.mxu0 %v725_v28 }
  0x47   :  { %728 = vmatpush3.bf16.msra.mxu0 %v727_v32 }
  0x48   :  { %730 = vmatprep.subr.bf16.mxu0 %v729_v33 }
  0x4b   :  { %732 = vmatpush3.bf16.msra.mxu0 %v731_v38 }
  0x4c   :  { %734 = vmatprep.subr.bf16.mxu0 %v733_v39 }
  0x4f   :  { %736 = vmatpush3.bf16.msra.mxu0 %v735_v44 }
  0x50   :  { %738 = vmatprep.subr.bf16.mxu0 %v737_v45 }
  0x53   :  { %740 = vmatpush3.bf16.msra.mxu0 %v739_v48 }
  0x56   :  { %435 = vmatmul.mubr.f32.vlgmr.msra.gmra.mrb[2].mxu0 %v218_v49 }
 0x109   :  { %v562_v50 = vpop.f32.mrb[0].mxu0 }
 0x10a   :  { %v563_v52 = vpop.f32.mrb[1].mxu0 }
 0x10b   :  { %v597_v53 = vpop.f32.mrb[0].mxu1  ;;  %v564_v54 = vadd.f32 %v563_v52, %v562_v50 }
 0x10c   :  { %v598_v55 = vpop.f32.mrb[1].mxu1 }
 0x10d   :  { %v599_v56 = vadd.f32 %v598_v55, %v597_v53  ;;  %v297_v57 = vadd.f32 %v564_v54, %v528_v51 }
 0x10f   :  { %v367_v58 = vadd.f32 %v599_v56, %v297_v57  ;;  %v506_v59 = vpop.f32.mrb[2].mxu1 }
 0x110   :  { %v644_v60 = vpop.f32.mrb[3].mxu1 }
 0x129   :  { %v632_v61 = vpop.f32.mrb[2].mxu0 }
 0x12a   :  { %v633_v62 = vpop.f32.mrb[3].mxu0 }
 0x12b   :  { %v634_v63 = vadd.f32 %v633_v62, %v632_v61 }
 0x12d   :  { %v437_v0 = vadd.f32 %v634_v63, %v367_v58 }
 0x12f   :  { %v507_v1 = vadd.f32 %v506_v59, %v437_v0 }
 0x131   :  { %510 = vst [vmem:[#allocation5] sm:$0xff] %v507_v1 }
 0x132   :  { %515 = vsyncadd [#allocation4], 96  ;;  %s821_s15 = smov [#allocation5]  }
 0x133   :  { %s516_s16 = sshll.u32 %s821_s15, 4  ;;  %s517_s16 = int_to_ptr.vmem [resolvable:$true] %s516_s16 }
 0x134   :  { %s788_s2 = scalar_lea.vmem %s517_s16, 32  ;;  %s792_s17 = scalar_lea.vmem %s517_s16, 128 }
 0x135   :  { %p789_p8 = scmp.ne.s32.totalorder %s517_s16, %s788_s2  ;;  %p793_p9 = scmp.lt.s32.totalorder %s517_s16, %s517_s16 }
 0x136   :  { %p794_p10 = scmp.lt.s32.totalorder %s792_s17, %s788_s2 }
 0x138   :  { %p795_p11 = por %p794_p10, %p793_p9 }
 0x13a   :  { %p796_p12 = pnand %p795_p11, %p789_p8 }
 0x13c   :  { %799 = shalt.err (!%p796_p12)
}
 0x13d   :  { %s800_s20 = scalar_lea.hbm %s908_s3, 32 }
 0x13e   :  { %p801_p13 = scmp.ne.s32.totalorder %s908_s3, %s800_s20  ;;  %p804_p0 = scmp.lt.u32.totalorder %s800_s20, %s908_s3 }
 0x140   :  { %p806_p1 = pnand %p804_p0, %p801_p13 }
 0x142   :  { %809 = shalt.err (!%p806_p1)
}
 0x143   :  { %s822_s25 = smov 32   ;;  %s823_s1 = smov 2  }
 0x144   :  { %522 = dma.vmem_to_hbm [thread:$0]  %s517_s16, 32, %s908_s3, [#allocation4], %s822_s25, %s822_s25, %s823_s1  }
 0x145   :  { %812 = dma.done.wait [#allocation4], 128  }
 0x146   :  { %813 = vsyncadd [#allocation4], 4294967168 }
 0x147   :  { %526 = vsyncpa [#allocation3], 1 }
 0x148   :  { %527 = vsyncpa [#allocation4], 1 }

</bundles_post_ra>
